<compile_context>
chip_gen: v6e
topology: v6e:2x2x1
jax: 0.10.0
libtpu: 0.0.40
codegen_flags: <defaults>
</compile_context>

<pallas_src>
import functools

import jax
import jax.numpy as jnp
from jax.experimental import pallas as pl
from jax.experimental.pallas import tpu as pltpu


def _hinge_loss_kernel(pred_ref, tgt_ref, out_ref, *, batch_size):
    i = pl.program_id(0)

    pred = pred_ref[...].astype(jnp.float32)          # (tile_b, C) f32
    tgt = tgt_ref[...]                                # (tile_b, 1) int32
    tb, c = pred.shape

    # (1, C) iota broadcast against the (tb, 1) targets -> (tb, C) one-hot,
    # without materializing a tile-sized int32 temp.
    col_ids = jax.lax.broadcasted_iota(jnp.int32, (1, c), 1)
    is_target = col_ids == tgt                        # (tb, C) bool

    # Correct-class score per row via masked cross-lane sum (XLU); fold the
    # +1.0 margin into the per-row bias so the hinge needs one add, not two.
    correct = jnp.sum(jnp.where(is_target, pred, 0.0), axis=1, keepdims=True)
    bias = 1.0 - correct                              # (tb, 1)

    # Hinge over ALL columns; the target column contributes exactly 1.0, so
    # subtract 1 per valid row instead of a second select.
    hinge_sum = jnp.sum(jnp.maximum(pred + bias, 0.0), axis=1, keepdims=True)
    per_row = hinge_sum - 1.0                         # (tb, 1)

    # Mask padded rows of a ragged last tile (global row index >= batch_size).
    row_ids = jax.lax.broadcasted_iota(jnp.int32, (tb, 1), 0)
    valid = (i * tb + row_ids) < jnp.int32(batch_size)
    per_row = jnp.where(valid, per_row, 0.0)

    # Per-tile partial sum; normalization happens in the wrapper.
    out_ref[...] = jnp.sum(per_row).reshape(1, 1, 1)


def _vmem_capacity_bytes():
    try:
        return int(pltpu.get_tpu_info().vmem_capacity_bytes)
    except Exception:
        return 64 << 20   # conservative (v7x-sized) fallback


def multi_class_hinge_loss(predictions, targets, *, tile_b=None):
    """predictions: (B, C) float (any dtype); targets: (B,) int. Returns scalar f32."""
    B, C = predictions.shape
    itemsize = predictions.dtype.itemsize

    # Per-row VMEM cost of ONE pipeline buffer:
    #   predictions: C * itemsize
    #   targets:     width-1 int32 block is lane-padded to 128 lanes -> 512 B
    #   (+ one f32 tile of headroom if the in-kernel upcast might materialize)
    row_bytes = C * itemsize + 512
    if itemsize < 4:
        row_bytes += C * 4

    vmem_cap = _vmem_capacity_bytes()
    big_vmem = vmem_cap >= (100 << 20)                 # v5e/v6e (128 MiB) vs v7x (64 MiB)
    step_budget = (28 << 20) if big_vmem else (20 << 20)
    vmem_limit_cap = (90 << 20) if big_vmem else (52 << 20)

    if tile_b is None:
        rows = max(16, (step_budget // row_bytes) // 16 * 16)   # sublane-aligned
        tile_b = B if rows >= B else int(rows)
    num_tiles = pl.cdiv(B, tile_b)

    # Double-buffered inputs + headroom, capped per generation.
    vmem_limit = int(min(max(2 * tile_b * row_bytes + (4 << 20), 8 << 20),
                         vmem_limit_cap))

    tgt2d = targets.astype(jnp.int32).reshape(B, 1)

    kernel = functools.partial(_hinge_loss_kernel, batch_size=B)

    partials = pl.pallas_call(
        kernel,
        out_shape=jax.ShapeDtypeStruct((num_tiles, 1, 1), jnp.float32),
        grid_spec=pltpu.PrefetchScalarGridSpec(
            num_scalar_prefetch=0,
            grid=(num_tiles,),
            in_specs=[
                pl.BlockSpec((tile_b, C), lambda i: (i, 0)),
                pl.BlockSpec((tile_b, 1), lambda i: (i, 0)),
            ],
            out_specs=pl.BlockSpec((1, 1, 1), lambda i: (i, 0, 0)),
        ),
        compiler_params=pltpu.CompilerParams(
            dimension_semantics=("parallel",),   # disjoint per-tile partials
            vmem_limit_bytes=vmem_limit,
        ),
    )(predictions, tgt2d)

    # NOTE: C == 1 is ill-defined (matches the PyTorch reference's div-by-zero).
    inv_norm = jnp.float32(1.0 / (B * (C - 1)))
    return jnp.sum(partials) * inv_norm


def _reference(predictions, targets):
    B, C = predictions.shape
    p = predictions.astype(jnp.float32)
    correct = p[jnp.arange(B), targets]
    margins = p - correct[:, None] + 1.0
    margins = margins.at[jnp.arange(B), targets].set(0.0)
    loss = jnp.sum(jnp.maximum(margins, 0.0), axis=1) / (C - 1)
    return jnp.mean(loss)


if __name__ == "__main__":
    key = jax.random.PRNGKey(0)
    k1, k2 = jax.random.split(key)

    # Small shapes consistent with the module: (batch, num_classes) scores + int targets.
    batch, num_classes = 8, 16
    predictions = jax.random.normal(k1, (batch, num_classes), dtype=jnp.float32)
    targets = jax.random.randint(k2, (batch,), 0, num_classes, dtype=jnp.int32)

    loss = multi_class_hinge_loss(predictions, targets)
    jax.block_until_ready(loss)
    ref = _reference(predictions, targets)
    assert jnp.allclose(loss, ref, atol=1e-5, rtol=1e-5), (loss, ref)

    # Exercise the multi-tile parallel partial-sum path with a ragged last tile
    # (B=20, tile=8 -> 3 tiles, last one half-padded).
    k3, k4 = jax.random.split(k2)
    batch2, num_classes2 = 20, 16
    predictions2 = jax.random.normal(k3, (batch2, num_classes2), dtype=jnp.float32)
    targets2 = jax.random.randint(k4, (batch2,), 0, num_classes2, dtype=jnp.int32)

    loss2 = multi_class_hinge_loss(predictions2, targets2, tile_b=8)
    jax.block_until_ready(loss2)
    ref2 = _reference(predictions2, targets2)
    assert jnp.allclose(loss2, ref2, atol=1e-5, rtol=1e-5), (loss2, ref2)

    print("KERNEL_OK")
</pallas_src>

<mosaic_0001>
module attributes {stable_mosaic.version = 11 : i64} {
  func.func @_hinge_loss_kernel(%arg0: i32, %arg1: memref<8x16xf32, #tpu.memory_space<vmem>>, %arg2: memref<8x1xi32, #tpu.memory_space<vmem>>, %arg3: memref<1x1x1xf32, #tpu.memory_space<vmem>>) attributes {dimension_semantics = [#tpu.dimension_semantics<parallel>], iteration_bounds = array<i64: 1>, scalar_prefetch = 0 : i64, scratch_operands = 0 : i64, tpu.core_type = #tpu.core_type<tc>, window_params = [{transform_indices = @transform_0, window_bounds = array<i64: 8, 16>}, {transform_indices = @transform_1, window_bounds = array<i64: 8, 1>}, {transform_indices = @transform_2, window_bounds = array<i64: 1, 1, 1>}]} {
    %c0 = arith.constant 0 : index
    %c0_0 = arith.constant 0 : index
    %0 = vector.load %arg1[%c0, %c0_0] : memref<8x16xf32, #tpu.memory_space<vmem>>, vector<8x16xf32>
    %c0_1 = arith.constant 0 : index
    %c0_2 = arith.constant 0 : index
    %1 = vector.load %arg2[%c0_1, %c0_2] : memref<8x1xi32, #tpu.memory_space<vmem>>, vector<8x1xi32>
    %2 = tpu.iota {dimensions = array<i32: 1>} : vector<1x16xi32>
    %3 = vector.broadcast %2 : vector<1x16xi32> to vector<8x16xi32>
    %4 = vector.broadcast %1 : vector<8x1xi32> to vector<8x16xi32>
    %5 = arith.cmpi eq, %3, %4 : vector<8x16xi32>
    %cst = arith.constant 0.000000e+00 : f32
    %6 = vector.broadcast %cst : f32 to vector<8x16xf32>
    %7 = arith.select %5, %0, %6 : vector<8x16xi1>, vector<8x16xf32>
    %cst_3 = arith.constant dense<0.000000e+00> : vector<8xf32>
    %8 = vector.multi_reduction <add>, %7, %cst_3 [1] : vector<8x16xf32> to vector<8xf32>
    %9 = vector.shape_cast %8 : vector<8xf32> to vector<8x1xf32>
    %cst_4 = arith.constant 1.000000e+00 : f32
    %10 = vector.broadcast %cst_4 : f32 to vector<8x1xf32>
    %11 = arith.subf %10, %9 : vector<8x1xf32>
    %12 = vector.broadcast %11 : vector<8x1xf32> to vector<8x16xf32>
    %13 = arith.addf %0, %12 : vector<8x16xf32>
    %cst_5 = arith.constant 0.000000e+00 : f32
    %14 = vector.broadcast %cst_5 : f32 to vector<8x16xf32>
    %15 = arith.maximumf %13, %14 : vector<8x16xf32>
    %cst_6 = arith.constant dense<0.000000e+00> : vector<8xf32>
    %16 = vector.multi_reduction <add>, %15, %cst_6 [1] : vector<8x16xf32> to vector<8xf32>
    %17 = vector.shape_cast %16 : vector<8xf32> to vector<8x1xf32>
    %cst_7 = arith.constant 1.000000e+00 : f32
    %18 = vector.broadcast %cst_7 : f32 to vector<8x1xf32>
    %19 = arith.subf %17, %18 : vector<8x1xf32>
    %20 = tpu.iota {dimensions = array<i32: 0>} : vector<8x1xi32>
    %c8_i32 = arith.constant 8 : i32
    %21 = arith.muli %arg0, %c8_i32 : i32
    %22 = vector.broadcast %21 : i32 to vector<8x1xi32>
    %23 = arith.addi %22, %20 : vector<8x1xi32>
    %c8_i32_8 = arith.constant 8 : i32
    %24 = vector.broadcast %c8_i32_8 : i32 to vector<8x1xi32>
    %25 = arith.cmpi slt, %23, %24 : vector<8x1xi32>
    %cst_9 = arith.constant 0.000000e+00 : f32
    %26 = vector.broadcast %cst_9 : f32 to vector<8x1xf32>
    %27 = arith.select %25, %19, %26 : vector<8x1xi1>, vector<8x1xf32>
    %28 = vector.shape_cast %27 : vector<8x1xf32> to vector<1x8x1xf32>
    %cst_10 = arith.constant dense<0.000000e+00> : vector<1xf32>
    %29 = vector.multi_reduction <add>, %28, %cst_10 [1, 2] : vector<1x8x1xf32> to vector<1xf32>
    %30 = vector.shape_cast %29 : vector<1xf32> to vector<1x1x1xf32>
    %31 = vector.extract %30[0, 0, 0] : f32 from vector<1x1x1xf32>
    %32 = vector.broadcast %31 : f32 to vector<1x1x1xf32>
    %c0_11 = arith.constant 0 : index
    %c0_12 = arith.constant 0 : index
    %c0_13 = arith.constant 0 : index
    %33 = vector.load %arg3[%c0_11, %c0_12, %c0_13] : memref<1x1x1xf32, #tpu.memory_space<vmem>>, vector<1x1x1xf32>
    tpu.vector_store %arg3[%c0_11, %c0_12, %c0_13], %32 {strides = array<i32>} : memref<1x1x1xf32, #tpu.memory_space<vmem>>, vector<1x1x1xf32>,
    return
  }
  func.func @transform_0(%arg0: i32) -> (i32, i32) {
    %c0_i32 = arith.constant 0 : i32
    %c0_i32_0 = arith.constant 0 : i32
    return %arg0, %c0_i32 : i32, i32
  }
  func.func @transform_1(%arg0: i32) -> (i32, i32) {
    %c0_i32 = arith.constant 0 : i32
    %c0_i32_0 = arith.constant 0 : i32
    return %arg0, %c0_i32 : i32, i32
  }
  func.func @transform_2(%arg0: i32) -> (i32, i32, i32) {
    %c0_i32 = arith.constant 0 : i32
    %c0_i32_0 = arith.constant 0 : i32
    %c0_i32_1 = arith.constant 0 : i32
    return %arg0, %c0_i32, %c0_i32_0 : i32, i32, i32
  }
}

</mosaic_0001>

<bundles_post_ra>
// kernel: tpu_custom_call.1
= control target key start
LH: loop header
LB: loop body
LE: loop exit
PB: predicated region body
PF: predicated region fallthrough
CT: control target
= control target key end

     0   :  { %s121_s0 = inlined_call_operand.vmem [shape: f32[8,16], index: 0, kind: input, shape index: {}]   ;;  %s122_s1 = inlined_call_operand.vmem [shape: s32[8,1], index: 1, kind: input, shape index: {}]   ;;  %s123_s2 = inlined_call_operand.hbm [shape: f32[1,1,1], index: 2, kind: output, shape index: {}]  }
   0x1   :  { %v13_v0 = vld [vmem:[%s122_s1] sm:$0xff] }
   0x2   :  { %7 = vsyncpa [#allocation3], 0  ;;  %v95_v1 = vmov 0   ;;  %v14_v2 = vlaneseq  ;;  %v12_v4 = vld [vmem:[%s121_s0] sm:$0xff]  ;;  %vm21_vm0 = vcmask 130048   ;;  %vm39_vm2 = vcmask 7168  }
   0x3   :  { %72 = vset.pattern.permute.xlu0 %v95_v1  ;;  %s96_s0 = smov [#allocation2]   ;;  %vm51_vm3 = vcmask 0  }
   0x4   :  { %17 = vperm.xlu0 %72, %v13_v0   ;;  %v15_v3 = vand.u32 127, %v14_v2  ;;  %s59_s1 = sshll.u32 %s96_s0, 4  ;;  %s60_s1 = int_to_ptr.vmem [resolvable:$true] %s59_s1 }
   0x5   :  { %s73_s14 = scalar_lea.vmem %s60_s1, 16  ;;  %s77_s15 = scalar_lea.vmem %s60_s1, 32 }
   0x6   :  { %p74_p0 = scmp.ne.s32.totalorder %s60_s1, %s73_s14  ;;  %p78_p1 = scmp.lt.s32.totalorder %s60_s1, %s60_s1 }
   0x7   :  { %p79_p2 = scmp.lt.s32.totalorder %s77_s15, %s73_s14 }
   0x9   :  { %p80_p3 = por %p79_p2, %p78_p1 }
   0xb   :  { %p81_p4 = pnand %p80_p3, %p74_p0 }
  0x7f   :  { %v18_v5 = vpop.permute.xlu0 %17 }
  0x80   :  { %vm19_vm1 = vcmp.eq.s32.totalorder %v15_v3, %v18_v5 }
  0x81   :  { %v20_v6 = vsel %vm19_vm1, %v12_v4, 0.0 }
  0x82   :  { %v22_v7 = vsel %vm21_vm0, %v20_v6, 0.0 }
  0x83   :  { %23 = vadd.xlane.f32.xlu0 %v22_v7 }
 0x10c   :  { %v24_v8 = vpop.xlane.xlu0 %23 }
 0x10d   :  { %v25_v9 = vsub.f32 1.0, %v24_v8 }
 0x10f   :  { %v26_v10 = vadd.f32 %v25_v9, %v12_v4 }
 0x111   :  { %v27_v11 = vmax.f32 %v26_v10, 0.0 }
 0x113   :  { %v28_v12 = vsel %vm21_vm0, %v27_v11, 0.0 }
 0x114   :  { %29 = vadd.xlane.f32.xlu1 %v28_v12 }
 0x19d   :  { %v30_v13 = vpop.xlane.xlu1 %29 }
 0x19e   :  { %v67_v14 = vadd.f32 -1.0, %v30_v13 }
 0x1a0   :  { %v40_v15 = vsel %vm39_vm2, %v67_v14, 0.0 }
 0x1a1   :  { %41 = vadd.xlane.f32.xlu1 %v40_v15 }
 0x22a   :  { %v42_v16 = vpop.xlane.xlu1 %41 }
 0x22b   :  { %v43_v17 = vrot.slane %v42_v16, 4 }
 0x22d   :  { %v44_v18 = vadd.f32 %v43_v17, %v42_v16 }
 0x22f   :  { %v45_v19 = vrot.slane %v44_v18, 2 }
 0x231   :  { %v46_v20 = vadd.f32 %v45_v19, %v44_v18 }
 0x233   :  { %v47_v21 = vrot.slane %v46_v20, 1 }
 0x235   :  { %v48_v22 = vadd.f32 %v47_v21, %v46_v20 }
 0x237   :  { %68 = vpush %v48_v22 }
 0x268   :  { %s69_s13 = spop %68 }
 0x269   :  { %v50_v23 = vstv %s69_s13 }
 0x26a   :  { %52 = vst.msk [vmem:[#allocation2] sm:$0x1] %vm51_vm3, %v50_v23 }
 0x26b   :  { %84 = shalt.err (!%p81_p4)
}
 0x26c   :  { %62 = dma.vmem_to_hbm [thread:$0]  %s60_s1, 16, %s123_s2, [#allocation3]  }
 0x26d   :  { %93 = dma.done.wait [#allocation3], 16  }
 0x26e   :  { %94 = vsyncadd [#allocation3], 4294967280 }
 0x26f   :  { %66 = vsyncpa [#allocation3], 1 }

</bundles_post_ra>
